<compile_context>
chip_gen: v5e
topology: v5e:2x2
jax: 0.10.0
libtpu: 0.0.40
codegen_flags: <defaults>
</compile_context>

<pallas_src>
import jax
import jax.numpy as jnp
from jax import lax
from jax.experimental import pallas as pl
from jax.experimental.pallas import tpu as pltpu

KH = KW = 7
STRIDE = 2
PAD = 3
CIN = 3
COUT = 64
K = CIN * KH * KW          # 147


def conv_fused_kernel(p_ref, w_ref, b_ref, o_ref):
    # p_ref: (K, tm)   w_ref: (COUT, K)   b_ref: (COUT, 1)   o_ref: (COUT, tm)
    acc = jnp.dot(w_ref[...], p_ref[...], preferred_element_type=jnp.float32)
    acc = acc + b_ref[...]                        # bias already includes +3.7
    o_ref[...] = (jnp.maximum(acc, 0.0) * 0.23).astype(o_ref.dtype)


def _round_up(x, m):
    return ((x + m - 1) // m) * m


def fused_conv_relu(x_nchw, weight, bias, *, tm=None, compute_dtype=jnp.float32):
    """x_nchw: (N, CIN, H, W) f32, weight: (COUT, CIN, KH, KW), bias: (COUT,)
       returns (N, COUT, OH, OW) f32."""
    N, C, H, W = x_nchw.shape
    assert C == CIN
    OH = (H + 2 * PAD - KH) // STRIDE + 1
    OW = (W + 2 * PAD - KW) // STRIDE + 1
    Msp = OH * OW

    # ---- glue: patch extraction as a single XLA conv (identity kernel) ------
    # Output feature index = ci*KH*KW + kh*KW + kw, matching the PyTorch
    # weight.reshape(COUT, CIN*KH*KW) flattening.
    patches = lax.conv_general_dilated_patches(
        x_nchw.astype(jnp.float32),
        filter_shape=(KH, KW),
        window_strides=(STRIDE, STRIDE),
        padding=((PAD, PAD), (PAD, PAD)),
    )                                              # (N, K, OH, OW)
    patches = patches.reshape(N, K, Msp)

    # Tile size along the spatial (lane) axis: one big lane-dense block.
    if tm is None:
        tm = min(_round_up(Msp, 128), 2048)
    Mp = _round_up(Msp, tm)
    if Mp != Msp:
        patches = jnp.pad(patches, ((0, 0), (0, 0), (0, Mp - Msp)))
    patches = patches.astype(compute_dtype)

    # weight (COUT, CIN, KH, KW) -> (COUT, K); bias folded with the +3.7.
    w_mat = weight.reshape(COUT, K).astype(compute_dtype)
    b_mat = (bias.astype(jnp.float32) + 3.7).reshape(COUT, 1)

    grid = (N, Mp // tm)

    out = pl.pallas_call(
        conv_fused_kernel,
        out_shape=jax.ShapeDtypeStruct((N, COUT, Mp), jnp.float32),
        grid=grid,
        in_specs=[
            pl.BlockSpec((None, K, tm), lambda n, m: (n, 0, m)),   # streamed
            pl.BlockSpec((COUT, K), lambda n, m: (0, 0)),          # resident
            pl.BlockSpec((COUT, 1), lambda n, m: (0, 0)),          # resident
        ],
        out_specs=pl.BlockSpec((None, COUT, tm), lambda n, m: (n, 0, m)),
        compiler_params=pltpu.CompilerParams(
            dimension_semantics=("parallel", "parallel")),
    )(patches, w_mat, b_mat)

    # (N, COUT, OH*OW) -> NCHW with no transpose, just strip pad + reshape.
    out = out[:, :, :Msp].reshape(N, COUT, OH, OW)
    return out


def reference(x_nchw, weight, bias):
    dn = lax.conv_dimension_numbers(x_nchw.shape, weight.shape,
                                    ("NCHW", "OIHW", "NCHW"))
    v1 = lax.conv_general_dilated(
        x_nchw, weight, window_strides=(STRIDE, STRIDE),
        padding=((PAD, PAD), (PAD, PAD)), dimension_numbers=dn)
    v1 = v1 + bias.reshape(1, COUT, 1, 1)
    v2 = v1 + 3.7
    return jnp.maximum(v2, 0.0) * 0.23


if __name__ == "__main__":
    key = jax.random.PRNGKey(0)
    k_x, k_w, k_b = jax.random.split(key, 3)

    # small shapes consistent with the module's forward (NCHW, 3 channels)
    N, H, W = 2, 32, 32
    x = jax.random.normal(k_x, (N, CIN, H, W), dtype=jnp.float32)

    fan_in = CIN * KH * KW
    w = jax.random.normal(k_w, (COUT, CIN, KH, KW), dtype=jnp.float32) / jnp.sqrt(fan_in)
    b = jax.random.normal(k_b, (COUT,), dtype=jnp.float32) * 0.01

    run = jax.jit(fused_conv_relu, static_argnames=("tm", "compute_dtype"))

    # f32 path (exact vs reference tolerance)
    out = jax.block_until_ready(run(x, w, b))
    ref = reference(x, w, b)
    assert out.shape == ref.shape == (N, COUT, H // STRIDE, W // STRIDE)
    assert jnp.allclose(out, ref, atol=1e-4, rtol=1e-4)

    # bf16-input path (v6e/v7x: full MXU rate, half streamed-DMA bytes),
    # f32 accumulation; checked with a loose tolerance.
    out_bf16 = jax.block_until_ready(run(x, w, b, compute_dtype=jnp.bfloat16))
    assert jnp.allclose(out_bf16, ref, atol=1e-1, rtol=1e-1)

    print("KERNEL_OK")
</pallas_src>

<mosaic_0001>
module attributes {stable_mosaic.version = 11 : i64} {
  func.func @conv_fused_kernel(%arg0: i32, %arg1: i32, %arg2: memref<1x147x256xf32, #tpu.memory_space<vmem>>, %arg3: memref<64x147xf32, #tpu.memory_space<vmem>>, %arg4: memref<64x1xf32, #tpu.memory_space<vmem>>, %arg5: memref<1x64x256xf32, #tpu.memory_space<vmem>>) attributes {dimension_semantics = [#tpu.dimension_semantics<parallel>, #tpu.dimension_semantics<parallel>], iteration_bounds = array<i64: 2, 1>, scalar_prefetch = 0 : i64, scratch_operands = 0 : i64, tpu.core_type = #tpu.core_type<tc>, window_params = [{transform_indices = @transform_0, window_bounds = array<i64: 1, 147, 256>}, {pipeline_mode = #tpu.pipeline_mode<synchronous>, transform_indices = @transform_1, window_bounds = array<i64: 64, 147>}, {pipeline_mode = #tpu.pipeline_mode<synchronous>, transform_indices = @transform_2, window_bounds = array<i64: 64, 1>}, {transform_indices = @transform_3, window_bounds = array<i64: 1, 64, 256>}]} {
    %c0 = arith.constant 0 : index
    %c0_0 = arith.constant 0 : index
    %0 = vector.load %arg3[%c0, %c0_0] : memref<64x147xf32, #tpu.memory_space<vmem>>, vector<64x147xf32>
    %c0_1 = arith.constant 0 : index
    %c0_2 = arith.constant 0 : index
    %c0_3 = arith.constant 0 : index
    %1 = vector.load %arg2[%c0_1, %c0_2, %c0_3] : memref<1x147x256xf32, #tpu.memory_space<vmem>>, vector<1x147x256xf32>
    %2 = vector.shape_cast %1 : vector<1x147x256xf32> to vector<147x256xf32>
    %cst = arith.constant dense<0.000000e+00> : vector<64x256xf32>
    %3 = tpu.matmul %0, %2, %cst {dimension_numbers = #tpu.dot_dimension_numbers<[1], [0], [0], [1], [0, 0, 1, 1], [], []>} : vector<64x147xf32>, vector<147x256xf32>, vector<64x256xf32> -> vector<64x256xf32>
    %c0_4 = arith.constant 0 : index
    %c0_5 = arith.constant 0 : index
    %4 = vector.load %arg4[%c0_4, %c0_5] : memref<64x1xf32, #tpu.memory_space<vmem>>, vector<64x1xf32>
    %5 = vector.broadcast %4 : vector<64x1xf32> to vector<64x256xf32>
    %6 = arith.addf %3, %5 : vector<64x256xf32>
    %cst_6 = arith.constant 0.000000e+00 : f32
    %7 = vector.broadcast %cst_6 : f32 to vector<64x256xf32>
    %8 = arith.maximumf %6, %7 : vector<64x256xf32>
    %cst_7 = arith.constant 2.300000e-01 : f32
    %9 = vector.broadcast %cst_7 : f32 to vector<64x256xf32>
    %10 = arith.mulf %8, %9 : vector<64x256xf32>
    %c0_8 = arith.constant 0 : index
    %c0_9 = arith.constant 0 : index
    %c0_10 = arith.constant 0 : index
    %11 = vector.load %arg5[%c0_8, %c0_9, %c0_10] : memref<1x64x256xf32, #tpu.memory_space<vmem>>, vector<1x64x256xf32>
    %12 = vector.shape_cast %11 : vector<1x64x256xf32> to vector<64x256xf32>
    %13 = vector.shape_cast %10 : vector<64x256xf32> to vector<1x64x256xf32>
    tpu.vector_store %arg5[%c0_8, %c0_9, %c0_10], %13 {strides = array<i32>} : memref<1x64x256xf32, #tpu.memory_space<vmem>>, vector<1x64x256xf32>,
    return
  }
  func.func @transform_0(%arg0: i32, %arg1: i32) -> (i32, i32, i32) {
    %c0_i32 = arith.constant 0 : i32
    %c0_i32_0 = arith.constant 0 : i32
    return %arg0, %c0_i32, %arg1 : i32, i32, i32
  }
  func.func @transform_1(%arg0: i32, %arg1: i32) -> (i32, i32) {
    %c0_i32 = arith.constant 0 : i32
    %c0_i32_0 = arith.constant 0 : i32
    %c0_i32_1 = arith.constant 0 : i32
    return %c0_i32, %c0_i32_0 : i32, i32
  }
  func.func @transform_2(%arg0: i32, %arg1: i32) -> (i32, i32) {
    %c0_i32 = arith.constant 0 : i32
    %c0_i32_0 = arith.constant 0 : i32
    %c0_i32_1 = arith.constant 0 : i32
    return %c0_i32, %c0_i32_0 : i32, i32
  }
  func.func @transform_3(%arg0: i32, %arg1: i32) -> (i32, i32, i32) {
    %c0_i32 = arith.constant 0 : i32
    %c0_i32_0 = arith.constant 0 : i32
    return %arg0, %c0_i32, %arg1 : i32, i32, i32
  }
}

</mosaic_0001>

<bundles_post_ra>
// kernel: fused_conv_relu.1
= control target key start
LH: loop header
LB: loop body
LE: loop exit
PB: predicated region body
PF: predicated region fallthrough
CT: control target
= control target key end

     0   :  { %s746_s12 = smov 0   ;;  %s748_s13 = smov 0   ;;  %s931_s0 = inlined_call_operand.vmem [shape: f32[2,147,256], index: 0, kind: input, shape index: {}]   ;;  %s932_s1 = inlined_call_operand.vmem [shape: f32[64,147], index: 1, kind: input, shape index: {}]   ;;  %s933_s2 = inlined_call_operand.vmem [shape: f32[64,1], index: 2, kind: input, shape index: {}]   ;;  %s934_s3 = inlined_call_operand.vmem [shape: f32[2,64,256], index: 3, kind: output, shape index: {}]  }
   0x1   :  { %s750_s14 = smov 0  }
   0x2 LB: > { %s25_s15 = sadd.s32 1, %s719_s13  ;;  %p647_p0 = scmp.ge.s32.totalorder %s723_s14, 1  ;;  %s723_s14 = sphi %s750_s14, %s13_s14   ;;  %s719_s13 = sphi %s748_s13, %s936_s13   ;;  %s715_s12 = sphi %s746_s12, %s935_s12  }
   0x3   : > { %p27_p1 = scmp.ge.s32.totalorder %s25_s15, 2  ;;  %p158_p2 = scmp.lt.s32.totalorder %s723_s14, 3 }
   0x5   : > { %s938_s15 = smov (%p27_p1, %s25_s15), 0  ;;  %p159_p3 = pnand %p647_p0, %p158_p2 }
   0x6   : > { %p191_p4 = scmp.lt.s32.totalorder (!%p159_p3), %s715_s12, 1 }
   0x7   : > { %162 = sbr.rel (%p159_p3) target bundleno = 245 (0xf5), region = 32 }
   0xc   : > { %s940_s12 = smov (!%p191_p4, %s715_s12), 1  ;;  %vm337_vm0 = vcmask 1042432   ;;  %v725_v16 = vmov 0   ;;  %v211_v23 = vld [vmem:[%s932_s1 + $0x8] sm:$0xff]  ;;  %vm312_vm1 = vcmask 154624   ;;  %v264_v28 = vld [vmem:[%s933_s2] sm:$0xff] }
   0xd   : > { %s672_s16 = smul.u32 304, %s940_s12  ;;  %698 = vset.pattern.permute.xlu0 %v725_v16  ;;  %699 = vset.pattern.permute.xlu1 %v725_v16  ;;  %v213_v33 = vld [vmem:[%s932_s1 + $0x18] sm:$0xff]  ;;  %v265_v38 = vld [vmem:[%s933_s2 + $0x8] sm:$0xff]  ;;  %v210_v43 = vld [vmem:[%s932_s1] sm:$0xff]  ;;  %s671_s22 = sshll.u32 %s940_s12, 7 }
   0xe   : > { %274 = vperm.xlu0 %698, %v264_v28   ;;  %700 = vset.pattern.permute.xlu2 %v725_v16  ;;  %v215_v44 = vld [vmem:[%s932_s1 + $0x28] sm:$0xff]  ;;  %v266_v45 = vld [vmem:[%s933_s2 + $0x10] sm:$0xff]  ;;  %v217_v47 = vld [vmem:[%s932_s1 + $0x38] sm:$0xff]  ;;  %s904_s25 = scalar_lea.vmem %s934_s3, %s671_s22 }
   0xf   : > { %s770_s19 = scalar_lea.vmem %s931_s0, %s672_s16  ;;  %284 = vperm.xlu1 %699, %v266_v45   ;;  %v212_v46 = vld [vmem:[%s932_s1 + $0x10] sm:$0xff]  ;;  %v267_v48 = vld [vmem:[%s933_s2 + $0x18] sm:$0xff]  ;;  %v214_v49 = vld [vmem:[%s932_s1 + $0x20] sm:$0xff] }
  0x10   : > { %v256_v0 = vld [vmem:[%s770_s19 + $0xf0] sm:$0xff]  ;;  %v257_v1 = vld [vmem:[%s770_s19 + $0xf8] sm:$0xff]  ;;  %v254_v2 = vld [vmem:[%s770_s19 + $0xe0] sm:$0xff] }
  0x11   : > { %344 = vmatpush.msra.mxu0 %v256_v0  ;;  %426 = vmatpush.msra.mxu2 %v257_v1  ;;  %v255_v3 = vld [vmem:[%s770_s19 + $0xe8] sm:$0xff]  ;;  %v252_v4 = vld [vmem:[%s770_s19 + $0xd0] sm:$0xff]  ;;  %v253_v5 = vld [vmem:[%s770_s19 + $0xd8] sm:$0xff] }
  0x12   : > { %v250_v6 = vld [vmem:[%s770_s19 + $0xc0] sm:$0xff]  ;;  %v251_v7 = vld [vmem:[%s770_s19 + $0xc8] sm:$0xff]  ;;  %v248_v8 = vld [vmem:[%s770_s19 + $0xb0] sm:$0xff] }
  0x13   : > { %345 = vmatpush.msra.mxu0 %v254_v2  ;;  %427 = vmatpush.msra.mxu2 %v255_v3  ;;  %v249_v9 = vld [vmem:[%s770_s19 + $0xb8] sm:$0xff]  ;;  %v246_v10 = vld [vmem:[%s770_s19 + $0xa0] sm:$0xff]  ;;  %v247_v11 = vld [vmem:[%s770_s19 + $0xa8] sm:$0xff] }
  0x14   : > { %v262_v12 = vld [vmem:[%s770_s19 + $0x120] sm:$0x7]  ;;  %v244_v13 = vld [vmem:[%s770_s19 + $0x90] sm:$0xff]  ;;  %v245_v14 = vld [vmem:[%s770_s19 + $0x98] sm:$0xff] }
  0x15   : > { %346 = vmatpush.msra.mxu0 %v252_v4  ;;  %428 = vmatpush.msra.mxu2 %v253_v5  ;;  %v263_v15 = vld [vmem:[%s770_s19 + $0x128] sm:$0x7]  ;;  %v260_v17 = vld [vmem:[%s770_s19 + $0x110] sm:$0xff]  ;;  %v261_v18 = vld [vmem:[%s770_s19 + $0x118] sm:$0xff] }
  0x16   : > { %651 = vmatpush.msk.msra.mxu1 %vm337_vm0, %v262_v12  ;;  %v242_v19 = vld [vmem:[%s770_s19 + $0x80] sm:$0xff]  ;;  %v243_v20 = vld [vmem:[%s770_s19 + $0x88] sm:$0xff]  ;;  %660 = vmatpush.msk.msra.mxu3 %vm337_vm0, %v263_v15  ;;  %v240_v24 = vld [vmem:[%s770_s19 + $0x70] sm:$0xff] }
  0x17   : > { %347 = vmatpush.msra.mxu0 %v250_v6  ;;  %429 = vmatpush.msra.mxu2 %v251_v7  ;;  %v258_v21 = vld [vmem:[%s770_s19 + $0x100] sm:$0xff]  ;;  %v259_v22 = vld [vmem:[%s770_s19 + $0x108] sm:$0xff]  ;;  %v241_v25 = vld [vmem:[%s770_s19 + $0x78] sm:$0xff] }
  0x18   : > { %399 = vmatpush.msra.mxu1 %v260_v17  ;;  %481 = vmatpush.msra.mxu3 %v261_v18  ;;  %v238_v26 = vld [vmem:[%s770_s19 + $0x60] sm:$0xff]  ;;  %v239_v27 = vld [vmem:[%s770_s19 + $0x68] sm:$0xff]  ;;  %v236_v29 = vld [vmem:[%s770_s19 + $0x50] sm:$0xff] }
  0x19   : > { %348 = vmatpush.msra.mxu0 %v248_v8  ;;  %430 = vmatpush.msra.mxu2 %v249_v9  ;;  %v237_v30 = vld [vmem:[%s770_s19 + $0x58] sm:$0xff]  ;;  %v234_v31 = vld [vmem:[%s770_s19 + $0x40] sm:$0xff]  ;;  %v235_v32 = vld [vmem:[%s770_s19 + $0x48] sm:$0xff] }
  0x1a   : > { %400 = vmatpush.msra.mxu1 %v258_v21  ;;  %482 = vmatpush.msra.mxu3 %v259_v22  ;;  %v232_v34 = vld [vmem:[%s770_s19 + $0x30] sm:$0xff]  ;;  %v233_v35 = vld [vmem:[%s770_s19 + $0x38] sm:$0xff]  ;;  %v230_v36 = vld [vmem:[%s770_s19 + $0x20] sm:$0xff] }
  0x1b   : > { %349 = vmatpush.msra.mxu0 %v246_v10  ;;  %431 = vmatpush.msra.mxu2 %v247_v11  ;;  %v231_v37 = vld [vmem:[%s770_s19 + $0x28] sm:$0xff]  ;;  %v228_v39 = vld [vmem:[%s770_s19 + $0x10] sm:$0xff]  ;;  %v229_v40 = vld [vmem:[%s770_s19 + $0x18] sm:$0xff] }
  0x1c   : > { %652 = vmatmul.msk.f32.vlgmr.msra.gmra.mxu1 %vm312_vm1, %v211_v23  ;;  %661 = vmatmul.msk.f32.vlgmr.msra.gmra.mxu3 %vm312_vm1, %v211_v23  ;;  %v226_v41 = vld [vmem:[%s770_s19] sm:$0xff]  ;;  %v227_v42 = vld [vmem:[%s770_s19 + $0x8] sm:$0xff]  ;;  %v216_v51 = vld [vmem:[%s932_s1 + $0x30] sm:$0xff] }
  0x1d   : > { %350 = vmatpush.msra.mxu0 %v244_v13  ;;  %432 = vmatpush.msra.mxu2 %v245_v14  ;;  %v219_v50 = vld [vmem:[%s932_s1 + $0x48] sm:$0xff]  ;;  %v221_v52 = vld [vmem:[%s932_s1 + $0x58] sm:$0xff]  ;;  %v270_v54 = vld [vmem:[%s933_s2 + $0x30] sm:$0xff] }
  0x1e   : > { %279 = vperm.xlu0 %698, %v265_v38   ;;  %289 = vperm.xlu1 %699, %v267_v48   ;;  %v271_v53 = vld [vmem:[%s933_s2 + $0x38] sm:$0xff]  ;;  %v268_v55 = vld [vmem:[%s933_s2 + $0x20] sm:$0xff]  ;;  %v223_v57 = vld [vmem:[%s932_s1 + $0x68] sm:$0xff] }
  0x1f   : > { %351 = vmatpush.msra.mxu0 %v242_v19  ;;  %433 = vmatpush.msra.mxu2 %v243_v20  ;;  %v218_v56 = vld [vmem:[%s932_s1 + $0x40] sm:$0xff]  ;;  %v269_v58 = vld [vmem:[%s933_s2 + $0x28] sm:$0xff]  ;;  %v220_v59 = vld [vmem:[%s932_s1 + $0x50] sm:$0xff] }
  0x20   : > { %294 = vperm.xlu2 %700, %v268_v55   ;;  %v225_v60 = vld [vmem:[%s932_s1 + $0x78] sm:$0xff]  ;;  %v222_v61 = vld [vmem:[%s932_s1 + $0x60] sm:$0xff]  ;;  %v224_v62 = vld [vmem:[%s932_s1 + $0x70] sm:$0xff] }
  0x21   : > { %352 = vmatpush.msra.mxu0 %v240_v24  ;;  %434 = vmatpush.msra.mxu2 %v241_v25 }
  0x23   : > { %353 = vmatpush.msra.mxu0 %v238_v26  ;;  %435 = vmatpush.msra.mxu2 %v239_v27 }
  0x24   : > { %653 = vmatmul.msk.f32.gmra.mxu1 %vm312_vm1, %v213_v33  ;;  %662 = vmatmul.msk.f32.gmra.mxu3 %vm312_vm1, %v213_v33 }
  0x25   : > { %354 = vmatpush.msra.mxu0 %v236_v29  ;;  %436 = vmatpush.msra.mxu2 %v237_v30 }
  0x26   : > { %309 = vperm.xlu1 %699, %v271_v53   ;;  %304 = vperm.xlu0 %698, %v270_v54  }
  0x27   : > { %355 = vmatpush.msra.mxu0 %v234_v31  ;;  %437 = vmatpush.msra.mxu2 %v235_v32 }
  0x28   : > { %299 = vperm.xlu2 %700, %v269_v58  }
  0x29   : > { %356 = vmatpush.msra.mxu0 %v232_v34  ;;  %438 = vmatpush.msra.mxu2 %v233_v35 }
  0x2b   : > { %357 = vmatpush.msra.mxu0 %v230_v36  ;;  %439 = vmatpush.msra.mxu2 %v231_v37 }
  0x2c   : > { %654 = vmatmul.msk.f32.gmra.mxu1 %vm312_vm1, %v215_v44  ;;  %663 = vmatmul.msk.f32.gmra.mxu3 %vm312_vm1, %v215_v44 }
  0x2d   : > { %358 = vmatpush.msra.mxu0 %v228_v39  ;;  %440 = vmatpush.msra.mxu2 %v229_v40 }
  0x2f   : > { %359 = vmatpush.msra.mxu0 %v226_v41  ;;  %441 = vmatpush.msra.mxu2 %v227_v42 }
  0x30   : > { %360 = vmatmul.f32.vlgmr.msra.gmra.mxu0 %v210_v43  ;;  %442 = vmatmul.f32.vlgmr.msra.gmra.mxu2 %v210_v43 }
  0x34   : > { %655 = vmatmul.msk.f32.gmra.mxu1 %vm312_vm1, %v217_v47  ;;  %664 = vmatmul.msk.f32.gmra.mxu3 %vm312_vm1, %v217_v47 }
  0x38   : > { %363 = vmatmul.f32.gmra.mxu0 %v212_v46  ;;  %445 = vmatmul.f32.gmra.mxu2 %v212_v46 }
  0x3c   : > { %656 = vmatmul.msk.f32.gmra.mxu1 %vm312_vm1, %v219_v50  ;;  %665 = vmatmul.msk.f32.gmra.mxu3 %vm312_vm1, %v219_v50 }
  0x40   : > { %366 = vmatmul.f32.gmra.mxu0 %v214_v49  ;;  %448 = vmatmul.f32.gmra.mxu2 %v214_v49 }
  0x44   : > { %657 = vmatmul.msk.f32.gmra.mxu1 %vm312_vm1, %v221_v52  ;;  %666 = vmatmul.msk.f32.gmra.mxu3 %vm312_vm1, %v221_v52 }
  0x48   : > { %369 = vmatmul.f32.gmra.mxu0 %v216_v51  ;;  %451 = vmatmul.f32.gmra.mxu2 %v216_v51 }
  0x4c   : > { %658 = vmatmul.msk.f32.gmra.mxu1 %vm312_vm1, %v223_v57  ;;  %667 = vmatmul.msk.f32.gmra.mxu3 %vm312_vm1, %v223_v57 }
  0x50   : > { %372 = vmatmul.f32.gmra.mxu0 %v218_v56  ;;  %454 = vmatmul.f32.gmra.mxu2 %v218_v56 }
  0x54   : > { %659 = vmatmul.msk.f32.gmra.mxu1 %vm312_vm1, %v225_v60  ;;  %668 = vmatmul.msk.f32.gmra.mxu3 %vm312_vm1, %v225_v60 }
  0x58   : > { %375 = vmatmul.f32.gmra.mxu0 %v220_v59  ;;  %457 = vmatmul.f32.gmra.mxu2 %v220_v59 }
  0x60   : > { %378 = vmatmul.f32.gmra.mxu0 %v222_v61  ;;  %460 = vmatmul.f32.gmra.mxu2 %v222_v61 }
  0x68   : > { %381 = vmatmul.f32.gmra.mxu0 %v224_v62  ;;  %463 = vmatmul.f32.gmra.mxu2 %v224_v62 }
  0x7a   : > { %v295_v44 = vpop.permute.xlu2 %294 }
  0x80   : > { %v275_v1 = vpop.permute.xlu0 %274 }
  0x81   : > { %v285_v18 = vpop.permute.xlu1 %284 }
  0x82   : > { %v300_v60 = vpop.permute.xlu2 %299 }
  0x90   : > { %v280_v8 = vpop.permute.xlu0 %279  ;;  %v290_v33 = vpop.permute.xlu1 %289 }
  0x99   : > { %v402_v63 = vpop.f32.mrf.mxu1 }
  0x9f   : > { %v484_v0 = vpop.f32.mrf.mxu3 }
  0xa1   : > { %v405_v2 = vpop.f32.mrf.mxu1 }
  0xa7   : > { %v487_v5 = vpop.f32.mrf.mxu3 }
  0xa9   : > { %v408_v10 = vpop.f32.mrf.mxu1 }
  0xad   : > { %v361_v3 = vpop.f32.mrf.mxu0 }
  0xae   : > { %v362_v4 = vadd.f32 %v361_v3, %v275_v1 }
  0xaf   : > { %v490_v19 = vpop.f32.mrf.mxu3 }
  0xb0   : > { %v403_v6 = vadd.f32 %v402_v63, %v362_v4 }
  0xb1   : > { %v411_v26 = vpop.f32.mrf.mxu1 }
  0xb2   : > { %v508_v7 = vmax.f32 %v403_v6, 0.0 }
  0xb3   : > { %v443_v9 = vpop.f32.mrf.mxu2 }
  0xb4   : > { %v524_v11 = vmul.f32 0.23, %v508_v7  ;;  %v444_v12 = vadd.f32 %v443_v9, %v275_v1 }
  0xb5   : > { %v364_v13 = vpop.f32.mrf.mxu0 }
  0xb6   : > { %540 = vst [vmem:[%s904_s25] sm:$0xff] %v524_v11  ;;  %v485_v14 = vadd.f32 %v484_v0, %v444_v12  ;;  %v365_v15 = vadd.f32 %v364_v13, %v280_v8  ;;  %v305_v11 = vpop.permute.xlu0 %304 }
  0xb7   : > { %v493_v35 = vpop.f32.mrf.mxu3 }
  0xb8   : > { %v509_v16 = vmax.f32 %v485_v14, 0.0  ;;  %v406_v17 = vadd.f32 %v405_v2, %v365_v15 }
  0xb9   : > { %v414_v41 = vpop.f32.mrf.mxu1 }
  0xba   : > { %v525_v20 = vmul.f32 0.23, %v509_v16  ;;  %v510_v21 = vmax.f32 %v406_v17, 0.0 }
  0xbb   : > { %v446_v22 = vpop.f32.mrf.mxu2 }
  0xbc   : > { %541 = vst [vmem:[%s904_s25 + $0x8] sm:$0xff] %v525_v20  ;;  %v526_v23 = vmul.f32 0.23, %v510_v21  ;;  %v447_v24 = vadd.f32 %v446_v22, %v280_v8  ;;  %v310_v21 = vpop.permute.xlu1 %309 }
  0xbd   : > { %v367_v25 = vpop.f32.mrf.mxu0 }
  0xbe   : > { %542 = vst [vmem:[%s904_s25 + $0x10] sm:$0xff] %v526_v23  ;;  %v488_v27 = vadd.f32 %v487_v5, %v447_v24  ;;  %v368_v28 = vadd.f32 %v367_v25, %v285_v18 }
  0xbf   : > { %v496_v51 = vpop.f32.mrf.mxu3 }
  0xc0   : > { %v511_v29 = vmax.f32 %v488_v27, 0.0  ;;  %v409_v30 = vadd.f32 %v408_v10, %v368_v28 }
  0xc1   : > { %v417_v56 = vpop.f32.mrf.mxu1 }
  0xc2   : > { %v527_v31 = vmul.f32 0.23, %v511_v29  ;;  %v512_v32 = vmax.f32 %v409_v30, 0.0 }
  0xc3   : > { %v449_v34 = vpop.f32.mrf.mxu2 }
  0xc4   : > { %543 = vst [vmem:[%s904_s25 + $0x18] sm:$0xff] %v527_v31  ;;  %v528_v36 = vmul.f32 0.23, %v512_v32  ;;  %v450_v37 = vadd.f32 %v449_v34, %v285_v18 }
  0xc5   : > { %v370_v38 = vpop.f32.mrf.mxu0 }
  0xc6   : > { %544 = vst [vmem:[%s904_s25 + $0x20] sm:$0xff] %v528_v36  ;;  %v491_v39 = vadd.f32 %v490_v19, %v450_v37  ;;  %v371_v40 = vadd.f32 %v370_v38, %v290_v33 }
  0xc7   : > { %v499_v2 = vpop.f32.mrf.mxu3 }
  0xc8   : > { %v513_v42 = vmax.f32 %v491_v39, 0.0  ;;  %v412_v43 = vadd.f32 %v411_v26, %v371_v40 }
  0xc9   : > { %v420_v8 = vpop.f32.mrf.mxu1 }
  0xca   : > { %v529_v45 = vmul.f32 0.23, %v513_v42  ;;  %v514_v46 = vmax.f32 %v412_v43, 0.0 }
  0xcb   : > { %v452_v47 = vpop.f32.mrf.mxu2 }
  0xcc   : > { %545 = vst [vmem:[%s904_s25 + $0x28] sm:$0xff] %v529_v45  ;;  %v530_v48 = vmul.f32 0.23, %v514_v46  ;;  %v453_v49 = vadd.f32 %v452_v47, %v290_v33 }
  0xcd   : > { %v373_v50 = vpop.f32.mrf.mxu0 }
  0xce   : > { %546 = vst [vmem:[%s904_s25 + $0x30] sm:$0xff] %v530_v48  ;;  %v494_v52 = vadd.f32 %v493_v35, %v453_v49  ;;  %v374_v53 = vadd.f32 %v373_v50, %v295_v44 }
  0xcf   : > { %v502_v17 = vpop.f32.mrf.mxu3 }
  0xd0   : > { %v515_v54 = vmax.f32 %v494_v52, 0.0  ;;  %v415_v55 = vadd.f32 %v414_v41, %v374_v53 }
  0xd1   : > { %v423_v25 = vpop.f32.mrf.mxu1 }
  0xd2   : > { %v531_v57 = vmul.f32 0.23, %v515_v54  ;;  %v516_v58 = vmax.f32 %v415_v55, 0.0 }
  0xd3   : > { %v455_v59 = vpop.f32.mrf.mxu2 }
  0xd4   : > { %547 = vst [vmem:[%s904_s25 + $0x38] sm:$0xff] %v531_v57  ;;  %v532_v61 = vmul.f32 0.23, %v516_v58  ;;  %v456_v62 = vadd.f32 %v455_v59, %v295_v44 }
  0xd5   : > { %v376_v63 = vpop.f32.mrf.mxu0 }
  0xd6   : > { %548 = vst [vmem:[%s904_s25 + $0x40] sm:$0xff] %v532_v61  ;;  %v497_v0 = vadd.f32 %v496_v51, %v456_v62  ;;  %v377_v1 = vadd.f32 %v376_v63, %v300_v60 }
  0xd7   : > { %v505_v33 = vpop.f32.mrf.mxu3 }
  0xd8   : > { %v517_v3 = vmax.f32 %v497_v0, 0.0  ;;  %v418_v4 = vadd.f32 %v417_v56, %v377_v1 }
  0xda   : > { %v533_v5 = vmul.f32 0.23, %v517_v3  ;;  %v518_v6 = vmax.f32 %v418_v4, 0.0 }
  0xdb   : > { %v458_v7 = vpop.f32.mrf.mxu2 }
  0xdc   : > { %549 = vst [vmem:[%s904_s25 + $0x48] sm:$0xff] %v533_v5  ;;  %v534_v9 = vmul.f32 0.23, %v518_v6  ;;  %v459_v10 = vadd.f32 %v458_v7, %v300_v60 }
  0xdd   : > { %v379_v12 = vpop.f32.mrf.mxu0 }
  0xde   : > { %550 = vst [vmem:[%s904_s25 + $0x50] sm:$0xff] %v534_v9  ;;  %v380_v13 = vadd.f32 %v379_v12, %v305_v11  ;;  %v500_v14 = vadd.f32 %v499_v2, %v459_v10 }
  0xe0   : > { %v519_v15 = vmax.f32 %v500_v14, 0.0  ;;  %v421_v16 = vadd.f32 %v420_v8, %v380_v13 }
  0xe2   : > { %v535_v18 = vmul.f32 0.23, %v519_v15  ;;  %v520_v19 = vmax.f32 %v421_v16, 0.0 }
  0xe3   : > { %v461_v20 = vpop.f32.mrf.mxu2 }
  0xe4   : > { %551 = vst [vmem:[%s904_s25 + $0x58] sm:$0xff] %v535_v18  ;;  %v536_v22 = vmul.f32 0.23, %v520_v19  ;;  %v462_v23 = vadd.f32 %v461_v20, %v305_v11 }
  0xe5   : > { %v382_v24 = vpop.f32.mrf.mxu0 }
  0xe6   : > { %552 = vst [vmem:[%s904_s25 + $0x60] sm:$0xff] %v536_v22  ;;  %v383_v26 = vadd.f32 %v382_v24, %v310_v21  ;;  %v503_v27 = vadd.f32 %v502_v17, %v462_v23 }
  0xe8   : > { %v521_v28 = vmax.f32 %v503_v27, 0.0  ;;  %v424_v29 = vadd.f32 %v423_v25, %v383_v26 }
  0xea   : > { %v537_v30 = vmul.f32 0.23, %v521_v28  ;;  %v522_v31 = vmax.f32 %v424_v29, 0.0 }
  0xeb   : > { %v464_v32 = vpop.f32.mrf.mxu2 }
  0xec   : > { %553 = vst [vmem:[%s904_s25 + $0x68] sm:$0xff] %v537_v30  ;;  %v538_v34 = vmul.f32 0.23, %v522_v31  ;;  %v465_v35 = vadd.f32 %v464_v32, %v310_v21 }
  0xee   : > { %554 = vst [vmem:[%s904_s25 + $0x70] sm:$0xff] %v538_v34  ;;  %v506_v36 = vadd.f32 %v505_v33, %v465_v35 }
  0xf0   : > { %v523_v37 = vmax.f32 %v506_v36, 0.0 }
  0xf2   : > { %v539_v38 = vmul.f32 0.23, %v523_v37 }
  0xf4   : > { %555 = vst [vmem:[%s904_s25 + $0x78] sm:$0xff] %v539_v38 }
  0xf5 PF: > { %s13_s14 = sadd.s32 1, %s723_s14   ;;  %s935_s12 = smov %s719_s13 }
  0xf6   : > { %p10_p5 = scmp.ge.s32.totalorder %s13_s14, 4   ;;  %s936_s13 = smov %s938_s15 }
  0xf8   :  { %12 = sbr.rel (!%p10_p5) target bundleno = 2 (0x2), region = 62 }

</bundles_post_ra>
